<compile_context>
chip_gen: v7x
topology: tpu7x:2x2x1
jax: 0.10.0
libtpu: 0.0.40
codegen_flags: <defaults>
</compile_context>

<pallas_src>
import jax
import jax.numpy as jnp
from jax.experimental import pallas as pl
from jax.experimental.pallas import tpu as pltpu


LANE = 128


def _round_up(x, m):
    return ((x + m - 1) // m) * m


def _cdiv(a, b):
    return -(-a // b)


# ----------------------------- Pallas kernel -------------------------------

def stem_matmul_bn_relu_kernel(p_ref, w_ref, shift_ref, o_ref):
    # p_ref:     (tmp, Kp)     bf16 packed im2col patches tile (p pixels / row)
    # w_ref:     (Kp, C_lane)  bf16 block-diag conv weight with BN scale folded
    # shift_ref: (1,  C_lane)  f32  tiled BN shift (beta - mean * scale)
    # o_ref:     (tmp, C_lane) bf16 lane-dense packed output tile
    acc = jnp.dot(p_ref[...], w_ref[...], preferred_element_type=jnp.float32)
    o_ref[...] = jnp.maximum(acc + shift_ref[...], 0.0).astype(o_ref.dtype)


# ------------------------------- Wrapper ------------------------------------

def ghostnet_stem(x_nchw, w_oihw, gamma, beta, running_mean, running_var,
                  eps=1e-5, tm=2048, out_dtype=jnp.bfloat16, nhwc_output=False):
    """GhostNetStem forward. x_nchw: (N, Cin, H, W) -> (N, Cout, Ho, Wo)."""
    N, Cin, H, W = x_nchw.shape
    Cout, _, KH, KW = w_oihw.shape
    stride, pad = 2, 1
    Ho = (H + 2 * pad - KH) // stride + 1
    Wo = (W + 2 * pad - KW) // stride + 1

    M = N * Ho * Wo
    K = KH * KW * Cin

    # Row packing: fold p consecutive output pixels into one lane-dense
    # 128-wide output row (removes the 8x lane zero-padding on the writeback).
    if Cout <= LANE and LANE % Cout == 0:
        p = LANE // Cout
        C_lane = p * Cout                       # == 128
    else:
        p = 1
        C_lane = _round_up(Cout, LANE)
    Kp = p * K

    # Tile size (counted in original M rows). Packed sublane dim = tm // p is
    # kept a multiple of 16 (bf16 sublane packing); big tiles amortize the
    # per-grid-step overhead and VMEM is nowhere near the limit.
    row_align = p * 16
    tm = max(row_align, min(tm, _round_up(M, row_align)))
    tm = _round_up(tm, row_align)
    # v7x has 2 TensorCores; keep grid_m >= 2 when there is enough work so the
    # single "parallel" grid axis can shard across both cores.
    if M > row_align and _cdiv(M, tm) < 2:
        tm = max(row_align, _round_up(_cdiv(M, 2), row_align))
    M_pad = _round_up(M, tm)
    grid_m = M_pad // tm
    tmp = tm // p                               # packed rows per tile

    # ---- glue: NCHW -> NHWC (bf16), pad, im2col (3x3 / stride 2 / pad 1) ----
    # Patches are materialized in bf16 so the dominant HBM slab is half-width.
    # TODO(synk): fuse the im2col into the kernel (memory_space=pl.ANY input +
    # manual double-buffered DMA of row slabs + in-VMEM tap assembly) so the
    # expanded patches array is never materialized in HBM.
    x = jnp.transpose(x_nchw, (0, 2, 3, 1)).astype(jnp.bfloat16)     # (N,H,W,Cin)
    xp = jnp.pad(x, ((0, 0), (pad, pad), (pad, pad), (0, 0)))
    taps = []
    for dy in range(KH):
        for dx in range(KW):
            taps.append(
                xp[:, dy:dy + stride * (Ho - 1) + 1:stride,
                       dx:dx + stride * (Wo - 1) + 1:stride, :])      # (N,Ho,Wo,Cin)
    # feature index = (dy*KW + dx)*Cin + c
    patches = jnp.concatenate(taps, axis=-1).reshape(M, K)            # (M, K) bf16
    if M_pad != M:
        patches = jnp.pad(patches, ((0, M_pad - M), (0, 0)))
    # Row-major reinterpretation: p consecutive output pixels per packed row.
    patches = patches.reshape(M_pad // p, Kp)

    # ---- glue: fold BN into the weight; build block-diagonal packed weight ----
    scale = (gamma / jnp.sqrt(running_var + eps)).astype(jnp.float32)   # (Cout,)
    shift = (beta - running_mean * scale).astype(jnp.float32)           # (Cout,)
    # OIHW -> (KH, KW, Cin, Cout) -> (K, Cout), matching patch feature ordering.
    w_mat = jnp.transpose(w_oihw, (2, 3, 1, 0)).reshape(K, Cout).astype(jnp.float32)
    w_mat = w_mat * scale[None, :]                                      # fold BN (f32)
    if p > 1:
        # Block-diagonal (p*K, p*Cout): packed sub-row j reads features
        # [j*K:(j+1)*K] and writes lanes [j*Cout:(j+1)*Cout].
        w_pack = jnp.kron(jnp.eye(p, dtype=jnp.float32), w_mat)
        shift_pack = jnp.tile(shift, p).reshape(1, C_lane)
    else:
        w_pack = jnp.pad(w_mat, ((0, 0), (0, C_lane - Cout)))
        shift_pack = jnp.pad(shift, (0, C_lane - Cout)).reshape(1, C_lane)
    w_pack = w_pack.astype(jnp.bfloat16)

    bytes_accessed = (
        (M_pad // p) * Kp * 2            # patches (bf16)
        + Kp * C_lane * 2                # weight  (bf16)
        + C_lane * 4                     # shift   (f32)
        + (M_pad // p) * C_lane * 2)     # output  (bf16)

    out_packed = pl.pallas_call(
        stem_matmul_bn_relu_kernel,
        out_shape=jax.ShapeDtypeStruct((M_pad // p, C_lane), jnp.bfloat16),
        grid_spec=pltpu.PrefetchScalarGridSpec(
            num_scalar_prefetch=0,
            grid=(grid_m,),
            in_specs=[
                pl.BlockSpec((tmp, Kp), lambda i: (i, 0)),       # packed patches
                pl.BlockSpec((Kp, C_lane), lambda i: (0, 0)),    # folded weight
                pl.BlockSpec((1, C_lane), lambda i: (0, 0)),     # BN shift
            ],
            out_specs=pl.BlockSpec((tmp, C_lane), lambda i: (i, 0)),
        ),
        compiler_params=pltpu.CompilerParams(
            dimension_semantics=("parallel",)),
        cost_estimate=pl.CostEstimate(
            flops=2 * M_pad * K * Cout,
            transcendentals=0,
            bytes_accessed=bytes_accessed),
    )(patches, w_pack, shift_pack)

    # ---- glue: unpack rows, drop padding (padded rows hold ReLU(shift)) ----
    if p > 1:
        out_flat = out_packed.reshape(M_pad, Cout)[:M]    # free row-major reinterpret
    else:
        out_flat = out_packed[:M, :Cout]
    out = out_flat.reshape(N, Ho, Wo, Cout).astype(out_dtype)
    if nhwc_output:
        # Preferred fast path: skip the NHWC->NCHW transpose (an extra HBM
        # round trip) when the consumer accepts NHWC.
        return out
    return jnp.transpose(out, (0, 3, 1, 2))               # (N, Cout, Ho, Wo)


# ------------------------------ Reference -----------------------------------

def ghostnet_stem_ref(x_nchw, w_oihw, gamma, beta, mean, var, eps=1e-5):
    y = jax.lax.conv_general_dilated(
        x_nchw.astype(jnp.float32), w_oihw.astype(jnp.float32),
        window_strides=(2, 2), padding=((1, 1), (1, 1)),
        dimension_numbers=("NCHW", "OIHW", "NCHW"))
    scale = gamma / jnp.sqrt(var + eps)
    shift = beta - mean * scale
    y = y * scale[None, :, None, None] + shift[None, :, None, None]
    return jnp.maximum(y, 0.0)


# -------------------------------- Main ---------------------------------------

if __name__ == "__main__":
    key = jax.random.PRNGKey(0)
    k_x, k_w, k_g, k_b, k_m, k_v = jax.random.split(key, 6)

    N, Cin, H, W = 2, 4, 16, 16
    Cout = 16  # GhostNet stem output channels

    x = jax.random.normal(k_x, (N, Cin, H, W), dtype=jnp.float32)
    # Conv2d(bias=False) weight, OIHW
    w = jax.random.normal(k_w, (Cout, Cin, 3, 3), dtype=jnp.float32) * 0.1
    # BatchNorm2d params + running stats (inference-mode folding)
    gamma = 1.0 + 0.1 * jax.random.normal(k_g, (Cout,), dtype=jnp.float32)
    beta = 0.1 * jax.random.normal(k_b, (Cout,), dtype=jnp.float32)
    running_mean = 0.1 * jax.random.normal(k_m, (Cout,), dtype=jnp.float32)
    running_var = jnp.abs(1.0 + 0.1 * jax.random.normal(k_v, (Cout,), dtype=jnp.float32))

    out = ghostnet_stem(x, w, gamma, beta, running_mean, running_var)
    out = jax.block_until_ready(out)

    ref = ghostnet_stem_ref(x, w, gamma, beta, running_mean, running_var)
    assert out.shape == (N, Cout, H // 2, W // 2), out.shape
    # bf16 matmul operands + bf16 output (f32 accumulation) -> looser tolerance.
    err = jnp.max(jnp.abs(out.astype(jnp.float32) - ref))
    assert jnp.allclose(out.astype(jnp.float32), ref, atol=3e-2, rtol=3e-2), float(err)

    print("KERNEL_OK")
</pallas_src>

<mosaic_0001>
module attributes {stable_mosaic.version = 11 : i64} {
  func.func @stem_matmul_bn_relu_kernel(%arg0: i32, %arg1: memref<16x288xbf16, #tpu.memory_space<vmem>>, %arg2: memref<288x128xbf16, #tpu.memory_space<vmem>>, %arg3: memref<1x128xf32, #tpu.memory_space<vmem>>, %arg4: memref<16x128xbf16, #tpu.memory_space<vmem>>) attributes {dimension_semantics = [#tpu.dimension_semantics<parallel>], iteration_bounds = array<i64: 1>, scalar_prefetch = 0 : i64, scratch_operands = 0 : i64, tpu.core_type = #tpu.core_type<tc>, window_params = [{transform_indices = @transform_0, window_bounds = array<i64: 16, 288>}, {pipeline_mode = #tpu.pipeline_mode<synchronous>, transform_indices = @transform_1, window_bounds = array<i64: 288, 128>}, {pipeline_mode = #tpu.pipeline_mode<synchronous>, transform_indices = @transform_2, window_bounds = array<i64: 1, 128>}, {transform_indices = @transform_3, window_bounds = array<i64: 16, 128>}]} {
    %c0 = arith.constant 0 : index
    %c0_0 = arith.constant 0 : index
    %0 = vector.load %arg1[%c0, %c0_0] : memref<16x288xbf16, #tpu.memory_space<vmem>>, vector<16x288xbf16>
    %c0_1 = arith.constant 0 : index
    %c0_2 = arith.constant 0 : index
    %1 = vector.load %arg2[%c0_1, %c0_2] : memref<288x128xbf16, #tpu.memory_space<vmem>>, vector<288x128xbf16>
    %cst = arith.constant dense<0.000000e+00> : vector<16x128xf32>
    %2 = tpu.matmul %0, %1, %cst {dimension_numbers = #tpu.dot_dimension_numbers<[1], [0], [0], [1], [0, 0, 1, 1], [], []>} : vector<16x288xbf16>, vector<288x128xbf16>, vector<16x128xf32> -> vector<16x128xf32>
    %c0_3 = arith.constant 0 : index
    %c0_4 = arith.constant 0 : index
    %3 = vector.load %arg3[%c0_3, %c0_4] : memref<1x128xf32, #tpu.memory_space<vmem>>, vector<1x128xf32>
    %4 = vector.broadcast %3 : vector<1x128xf32> to vector<16x128xf32>
    %5 = arith.addf %2, %4 : vector<16x128xf32>
    %cst_5 = arith.constant 0.000000e+00 : f32
    %6 = vector.broadcast %cst_5 : f32 to vector<16x128xf32>
    %7 = arith.maximumf %5, %6 : vector<16x128xf32>
    %8 = arith.truncf %7 : vector<16x128xf32> to vector<16x128xbf16>
    %c0_6 = arith.constant 0 : index
    %c0_7 = arith.constant 0 : index
    %9 = vector.load %arg4[%c0_6, %c0_7] : memref<16x128xbf16, #tpu.memory_space<vmem>>, vector<16x128xbf16>
    tpu.vector_store %arg4[%c0_6, %c0_7], %8 {strides = array<i32>} : memref<16x128xbf16, #tpu.memory_space<vmem>>, vector<16x128xbf16>,
    return
  }
  func.func @transform_0(%arg0: i32) -> (i32, i32) {
    %c0_i32 = arith.constant 0 : i32
    %c0_i32_0 = arith.constant 0 : i32
    return %arg0, %c0_i32 : i32, i32
  }
  func.func @transform_1(%arg0: i32) -> (i32, i32) {
    %c0_i32 = arith.constant 0 : i32
    %c0_i32_0 = arith.constant 0 : i32
    %c0_i32_1 = arith.constant 0 : i32
    return %c0_i32, %c0_i32_0 : i32, i32
  }
  func.func @transform_2(%arg0: i32) -> (i32, i32) {
    %c0_i32 = arith.constant 0 : i32
    %c0_i32_0 = arith.constant 0 : i32
    %c0_i32_1 = arith.constant 0 : i32
    return %c0_i32, %c0_i32_0 : i32, i32
  }
  func.func @transform_3(%arg0: i32) -> (i32, i32) {
    %c0_i32 = arith.constant 0 : i32
    %c0_i32_0 = arith.constant 0 : i32
    return %arg0, %c0_i32 : i32, i32
  }
}

</mosaic_0001>

<bundles_post_ra>
// kernel: tpu_custom_call.1
= control target key start
LH: loop header
LB: loop body
LE: loop exit
PB: predicated region body
PF: predicated region fallthrough
CT: control target
= control target key end

     0   :  { %8 = vsyncpa [#allocation3], 0  ;;  %s572_s0 = inlined_call_operand.hbm [shape: bf16[16,288], index: 0, kind: input, shape index: {}]   ;;  %s573_s1 = inlined_call_operand.hbm [shape: bf16[288,128], index: 1, kind: input, shape index: {}]   ;;  %s574_s2 = inlined_call_operand.vmem [shape: f32[1,128], index: 2, kind: input, shape index: {}]   ;;  %s575_s3 = inlined_call_operand.hbm [shape: bf16[16,128], index: 3, kind: output, shape index: {}]  }
   0x1   :  { %9 = vsyncpa [#allocation6], 0 }
   0x2   :  { %10 = vsyncpa [#allocation4], 0  ;;  %s498_s12 = smov [#allocation2]   ;;  %s426_s16 = scalar_lea.hbm %s572_s0, 384 }
   0x3   :  { %s16_s13 = sshll.u32 %s498_s12, 4  ;;  %p427_p0 = scmp.ne.s32.totalorder %s572_s0, %s426_s16  ;;  %s17_s13 = int_to_ptr.vmem [resolvable:$true] %s16_s13 }
   0x4   :  { %p430_p1 = scmp.lt.u32.totalorder %s426_s16, %s572_s0 }
   0x6   :  { %p432_p2 = pnand %p430_p1, %p427_p0 }
   0x8   :  { %435 = shalt.err (!%p432_p2)
}
   0x9   :  { %s436_s21 = scalar_lea.vmem %s17_s13, 384  ;;  %p441_p4 = scmp.lt.s32.totalorder %s17_s13, %s17_s13 }
   0xa   :  { %p437_p3 = scmp.ne.s32.totalorder %s17_s13, %s436_s21  ;;  %p442_p5 = scmp.lt.s32.totalorder %s436_s21, %s436_s21 }
   0xc   :  { %p443_p6 = por %p442_p5, %p441_p4 }
   0xe   :  { %p444_p7 = pnand %p443_p6, %p437_p3 }
  0x10   :  { %447 = shalt.err (!%p444_p7)
}
  0x11   :  { %s499_s22 = smov 192   ;;  %s500_s23 = smov 12  }
  0x12   :  { %22 = dma.hbm_to_vmem [thread:$0]  %s572_s0, 384, %s17_s13, [#allocation3], %s499_s22, %s499_s22, %s500_s23  }
  0x13   :  { %s501_s26 = smov [#allocation5]   ;;  %s448_s30 = scalar_lea.hbm %s573_s1, 2304 }
  0x14   :  { %s28_s27 = sshll.u32 %s501_s26, 4  ;;  %p449_p8 = scmp.ne.s32.totalorder %s573_s1, %s448_s30  ;;  %s29_s27 = int_to_ptr.vmem [resolvable:$true] %s28_s27 }
  0x15   :  { %p452_p9 = scmp.lt.u32.totalorder %s448_s30, %s573_s1 }
  0x17   :  { %p454_p10 = pnand %p452_p9, %p449_p8 }
  0x19   :  { %457 = shalt.err (!%p454_p10)
}
  0x1a   :  { %s458_s8 = scalar_lea.vmem %s29_s27, 2304  ;;  %p463_p12 = scmp.lt.s32.totalorder %s29_s27, %s29_s27 }
  0x1b   :  { %p459_p11 = scmp.ne.s32.totalorder %s29_s27, %s458_s8  ;;  %p464_p13 = scmp.lt.s32.totalorder %s458_s8, %s458_s8 }
  0x1d   :  { %p465_p0 = por %p464_p13, %p463_p12 }
  0x1f   :  { %p466_p1 = pnand %p465_p0, %p459_p11 }
  0x21   :  { %469 = shalt.err (!%p466_p1)
}
  0x22   :  { %s502_s0 = smov 64   ;;  %s503_s9 = smov 4  }
  0x23   :  { %34 = dma.hbm_to_vmem [thread:$0]  %s573_s1, 2304, %s29_s27, [#allocation6], %s502_s0, %s502_s0, %s503_s9  }
  0x24   :  { %492 = dma.done.wait [#allocation3], 384  }
  0x25   :  { %493 = vsyncadd [#allocation3], 4294966912 }
  0x26   :  { %494 = dma.done.wait [#allocation6], 2304  }
  0x27   :  { %495 = vsyncadd [#allocation6], 4294964992  ;;  %v504_v0 = vmov 0.0   ;;  %vm505_vm0 = vmmov 0   ;;  %v404_v1 = vld [vmem:[#allocation5 + $0x40] sm:$0xff]   ;;  %v406_v3 = vld [vmem:[#allocation5 + $0x48] sm:$0xff]  }
  0x28   :  { %387 = vmatprep.subr.bf16.mxu1 %v504_v0  ;;  %391 = vmatprep.mubr.msk.bf16.mxu1 %vm505_vm0, %v504_v0  ;;  %v405_v2 = vld [vmem:[#allocation5] sm:$0xff]   ;;  %v407_v4 = vld [vmem:[#allocation5 + $0x8] sm:$0xff]   ;;  %v408_v5 = vld [vmem:[#allocation5 + $0x50] sm:$0xff]   ;;  %vm214_vm1 = vcmask 261120   ;;  %s506_s13 = smov [#allocation7]  }
  0x29   :  { %362 = vmatprep.subr.bf16.mxu0 %v404_v1  ;;  %v409_v6 = vld [vmem:[#allocation5 + $0x10] sm:$0xff]   ;;  %v410_v7 = vld [vmem:[#allocation5 + $0x58] sm:$0xff]   ;;  %v412_v9 = vld [vmem:[#allocation5 + $0x60] sm:$0xff]   ;;  %s317_s14 = sshll.u32 %s506_s13, 4  ;;  %s318_s14 = int_to_ptr.vmem [resolvable:$true] %s317_s14 }
  0x2a   :  { %363 = vmatpush3.bf16.msra.mxu0 %v405_v2  ;;  %v411_v8 = vld [vmem:[#allocation5 + $0x18] sm:$0xff]   ;;  %v418_v10 = vld [vmem:[#allocation5 + $0x80] sm:$0xff]   ;;  %v414_v12 = vld [vmem:[#allocation5 + $0x68] sm:$0xff]   ;;  %s470_s15 = scalar_lea.vmem %s318_s14, 128  ;;  %p475_p3 = scmp.lt.s32.totalorder %s318_s14, %s318_s14 }
  0x2b   :  { %364 = vmatprep.subr.bf16.mxu0 %v406_v3  ;;  %v413_v11 = vld [vmem:[#allocation5 + $0x20] sm:$0xff]   ;;  %388 = vmatpush3.bf16.msra.mxu1 %v418_v10  ;;  %v415_v13 = vld [vmem:[#allocation5 + $0x28] sm:$0xff]   ;;  %v416_v16 = vld [vmem:[#allocation5 + $0x70] sm:$0xff]   ;;  %p471_p2 = scmp.ne.s32.totalorder %s318_s14, %s470_s15  ;;  %p476_p4 = scmp.lt.s32.totalorder %s470_s15, %s470_s15 }
  0x2c   :  { %389 = vmatprep.subr.bf16.mxu1 %v504_v0  ;;  %v423_v14 = vld [vmem:[#allocation2 + $0x4] ss:$12 sps:$4 sm:$0xff]   ;;  %v425_v17 = vld [vmem:[#allocation2 + $0x8] ss:$12 sps:$4 sm:$0xff]   ;;  %v421_v21 = vld [vmem:[#allocation2] ss:$12 sps:$4 sm:$0xff]  }
  0x2d   :  { %v424_v15 = vld [vmem:[#allocation5 + $0x88] sm:$0xff]   ;;  %250 = vmatprep.mubr.bf16.mxu0 %v423_v14  ;;  %v417_v18 = vld [vmem:[#allocation5 + $0x30] sm:$0xff]   ;;  %v419_v19 = vld [vmem:[#allocation5 + $0x78] sm:$0xff]   ;;  %p477_p5 = por %p476_p4, %p475_p3 }
  0x2e   :  { %365 = vmatpush3.bf16.msra.mxu0 %v407_v4  ;;  %v420_v20 = vld [vmem:[#allocation5 + $0x38] sm:$0xff]   ;;  %v330_v28 = vld [vmem:[%s574_s2] ss:$0 sm:$0xff] }
  0x2f   :  { %366 = vmatprep.subr.bf16.mxu0 %v408_v5  ;;  %390 = vmatpush3.bf16.msra.mxu1 %v424_v15  ;;  %p478_p6 = pnand %p477_p5, %p471_p2 }
  0x32   :  { %367 = vmatpush3.bf16.msra.mxu0 %v409_v6  ;;  %392 = vmatmul.mubr.msk.bf16.vlgmr.msra.gmra.mrb[0].mxu1 %vm214_vm1, %v425_v17 }
  0x33   :  { %368 = vmatprep.subr.bf16.mxu0 %v410_v7 }
  0x36   :  { %369 = vmatpush3.bf16.msra.mxu0 %v411_v8 }
  0x37   :  { %370 = vmatprep.subr.bf16.mxu0 %v412_v9 }
  0x3a   :  { %371 = vmatpush3.bf16.msra.mxu0 %v413_v11 }
  0x3b   :  { %372 = vmatprep.subr.bf16.mxu0 %v414_v12 }
  0x3e   :  { %373 = vmatpush3.bf16.msra.mxu0 %v415_v13 }
  0x3f   :  { %374 = vmatprep.subr.bf16.mxu0 %v416_v16 }
  0x42   :  { %375 = vmatpush3.bf16.msra.mxu0 %v417_v18 }
  0x43   :  { %376 = vmatprep.subr.bf16.mxu0 %v419_v19 }
  0x46   :  { %377 = vmatpush3.bf16.msra.mxu0 %v420_v20 }
  0x49   :  { %251 = vmatmul.mubr.bf16.vlgmr.msra.gmra.mrb[0].mxu0 %v421_v21 }
 0x105   :  { %v293_v22 = vpop.f32.mrb[0].mxu1 }
 0x106   :  { %v393_v23 = vpop.f32.mrb[1].mxu1 }
 0x107   :  { %v296_v24 = vpop.f32.mrb[2].mxu1 }
 0x108   :  { %v394_v25 = vpop.f32.mrb[3].mxu1 }
 0x11c   :  { %v378_v26 = vpop.f32.mrb[0].mxu0 }
 0x11d   :  { %v379_v27 = vpop.f32.mrb[1].mxu0 }
 0x11e   :  { %v380_v29 = vadd.f32 %v379_v27, %v378_v26  ;;  %v381_v30 = vpop.f32.mrb[2].mxu0 }
 0x11f   :  { %v382_v31 = vpop.f32.mrb[3].mxu0 }
 0x120   :  { %v253_v32 = vadd.f32 %v380_v29, %v330_v28  ;;  %v383_v33 = vadd.f32 %v382_v31, %v381_v30 }
 0x122   :  { %v294_v34 = vadd.f32 %v293_v22, %v253_v32  ;;  %v256_v35 = vadd.f32 %v383_v33, %v330_v28 }
 0x124   :  { %v297_v36 = vadd.f32 %v296_v24, %v256_v35  ;;  %v300_v37 = vmax.f32 %v294_v34, 0.0 }
 0x126   :  { %v301_v38 = vmax.f32 %v297_v36, 0.0 }
 0x128   :  { %v360_v39 = vpack.c.bf16 %v301_v38, %v300_v37 }
 0x12a   :  { %361 = vst [vmem:[#allocation7] sm:$0xff] %v360_v39  }
 0x12b   :  { %481 = shalt.err (!%p478_p6)
}
 0x12c   :  { %s482_s17 = scalar_lea.hbm %s575_s3, 128 }
 0x12d   :  { %p483_p7 = scmp.ne.s32.totalorder %s575_s3, %s482_s17  ;;  %p486_p8 = scmp.lt.u32.totalorder %s482_s17, %s575_s3 }
 0x12f   :  { %p488_p9 = pnand %p486_p8, %p483_p7 }
 0x131   :  { %491 = shalt.err (!%p488_p9)
}
 0x132   :  { %323 = dma.vmem_to_hbm [thread:$0]  %s318_s14, 128, %s575_s3, [#allocation4], %s502_s0, %s502_s0, %s503_s9  }
 0x133   :  { %496 = dma.done.wait [#allocation4], 128  }
 0x134   :  { %497 = vsyncadd [#allocation4], 4294967168 }
 0x135   :  { %327 = vsyncpa [#allocation3], 1 }
 0x136   :  { %328 = vsyncpa [#allocation6], 1 }
 0x137   :  { %329 = vsyncpa [#allocation4], 1 }

</bundles_post_ra>
